<compile_context>
chip_gen: v7x
topology: tpu7x:2x2x1
jax: 0.10.0
libtpu: 0.0.40
codegen_flags: <defaults>
</compile_context>

<pallas_src>
import functools

import jax
import jax.numpy as jnp
from jax import lax
from jax.experimental import pallas as pl
from jax.experimental.pallas import tpu as pltpu

KERNEL_SIZE = 3


def _round_up(a, b):
    return (a + b - 1) // b * b


def _tcn_kernel(x_ref, w1_ref, b1_ref, w2_ref, b2_ref, wl_ref, bl_ref, o_ref):
    TM, L = x_ref.shape
    C1 = w1_ref.shape[1]
    C2 = w2_ref.shape[1]
    f32 = jnp.float32
    bf16 = jnp.bfloat16

    x = x_ref[...]                                            # (TM, L) f32

    # ---- conv1: Conv1d(1, C1, k=3, pad=1) + ReLU on the VPU (f32) ----------
    zc = jnp.zeros((TM, 1), f32)
    x_prev = jnp.concatenate([zc, x[:, :L - 1]], axis=1)      # x[t-1] (zero pad)
    x_next = jnp.concatenate([x[:, 1:], zc], axis=1)          # x[t+1] (zero pad)
    w1 = w1_ref[...]                                          # (3, C1)
    h1 = (x_prev[:, :, None] * w1[0][None, None, :]
          + x[:, :, None] * w1[1][None, None, :]
          + x_next[:, :, None] * w1[2][None, None, :]
          + b1_ref[0][None, None, :])                         # bias added once
    h1 = jnp.maximum(h1, 0.0).astype(bf16)                    # (TM, L, C1) bf16

    # ---- conv2: single fused K=3*C1 MXU matmul (bf16 operands, f32 acc) ----
    zrow = jnp.zeros((TM, 1, C1), bf16)
    taps = jnp.concatenate(
        [jnp.concatenate([zrow, h1[:, :L - 1, :]], axis=1),   # h1[t-1]
         h1,                                                  # h1[t]
         jnp.concatenate([h1[:, 1:, :], zrow], axis=1)],      # h1[t+1]
        axis=-1).reshape(TM * L, 3 * C1)                      # (TM*L, 3*C1) bf16
    acc = jnp.dot(taps, w2_ref[...], preferred_element_type=f32)   # (TM*L, C2)
    h2 = jnp.maximum(acc + b2_ref[0][None, :], 0.0).reshape(TM, L, C2)

    # ---- global max-pool over time (F.max_pool1d over full length) ---------
    pooled = jnp.max(h2, axis=1)                              # (TM, C2) f32

    # ---- linear (bf16 operands, f32 accumulation), lane-dense output -------
    out = jnp.dot(pooled.astype(bf16), wl_ref[...],
                  preferred_element_type=f32)                 # (TM, O_pad)
    o_ref[...] = out + bl_ref[0][None, :]


@functools.partial(jax.jit, static_argnames=("tile_m",))
def temporal_encoder_tcn(x, w1, b1, w2, b2, wl, bl, *, tile_m=256):
    """x: (B, N, L) float32. Weights in PyTorch layouts:
       w1 (C1, 1, K), b1 (C1,), w2 (C2, C1, K), b2 (C2,), wl (O, C2), bl (O,)."""
    B, N, L = x.shape
    M = B * N
    C1 = w1.shape[0]
    C2 = w2.shape[0]
    K = w1.shape[2]
    O = wl.shape[0]
    assert w1.shape[1] == 1 and K == KERNEL_SIZE

    # ---- tile sizing: big tiles amortize the ~0.35us per-grid-step overhead;
    #      cap TM*L so the in-kernel temporaries (~2.5 KiB per (row, t)) stay
    #      well under scoped VMEM on every generation (v7x: 64 MiB physical).
    max_rows = 4096                                   # TM*L budget (~10 MiB temps)
    tile = min(int(tile_m), max(8, (max_rows // max(L, 1)) & ~7))
    tile = max(8, tile & ~7)
    tile = min(tile, _round_up(M, 8))
    M_pad = _round_up(M, tile)                        # remainder handled by padding

    O_pad = max(128, _round_up(O, 128))               # lane-dense output stores

    # ---- weight layouts for the kernel (channel-last) ----
    w1k = jnp.transpose(w1[:, 0, :], (1, 0)).astype(jnp.float32)          # (K, C1)
    w2f = jnp.transpose(w2, (2, 1, 0)).reshape(K * C1, C2).astype(jnp.bfloat16)
    wl_pad = jnp.zeros((O_pad, C2), jnp.float32).at[:O].set(wl)
    wlT = jnp.transpose(wl_pad, (1, 0)).astype(jnp.bfloat16)              # (C2, O_pad)
    bl_pad = jnp.zeros((O_pad,), jnp.float32).at[:O].set(bl)

    x_flat = x.reshape(M, L).astype(jnp.float32)
    if M_pad != M:
        x_flat = jnp.pad(x_flat, ((0, M_pad - M), (0, 0)))

    # ---- per-generation VMEM limit (v7x has less physical VMEM) ----
    try:
        vmem_cap = int(pltpu.get_tpu_info().vmem_capacity_bytes)
    except Exception:
        vmem_cap = 64 * 1024 * 1024
    vmem_limit = min(96 * 1024 * 1024, (vmem_cap * 3) // 4)

    flops = 2 * M_pad * L * (K * C1 + K * C1 * C2) + 2 * M_pad * C2 * O_pad
    bytes_accessed = (x_flat.size * 4 + M_pad * O_pad * 4 + w1k.size * 4
                      + C1 * 4 + w2f.size * 2 + C2 * 4 + wlT.size * 2 + O_pad * 4)
    cost = pl.CostEstimate(flops=flops, transcendentals=0,
                           bytes_accessed=bytes_accessed)

    out = pl.pallas_call(
        _tcn_kernel,
        out_shape=jax.ShapeDtypeStruct((M_pad, O_pad), jnp.float32),
        grid_spec=pltpu.PrefetchScalarGridSpec(
            num_scalar_prefetch=0,
            grid=(M_pad // tile,),
            in_specs=[
                pl.BlockSpec((tile, L), lambda i: (i, 0)),
                pl.BlockSpec((K, C1), lambda i: (0, 0)),
                pl.BlockSpec((1, C1), lambda i: (0, 0)),
                pl.BlockSpec((K * C1, C2), lambda i: (0, 0)),
                pl.BlockSpec((1, C2), lambda i: (0, 0)),
                pl.BlockSpec((C2, O_pad), lambda i: (0, 0)),
                pl.BlockSpec((1, O_pad), lambda i: (0, 0)),
            ],
            out_specs=pl.BlockSpec((tile, O_pad), lambda i: (i, 0)),
        ),
        compiler_params=pltpu.CompilerParams(
            dimension_semantics=("parallel",),
            vmem_limit_bytes=vmem_limit),
        cost_estimate=cost,
    )(x_flat, w1k, b1.reshape(1, C1), w2f, b2.reshape(1, C2),
      wlT, bl_pad.reshape(1, O_pad))
    return out[:M, :O].reshape(B, N, O)


def init_params(key, input_dim=1, num_channels=(128, 128), kernel_size=3,
                output_size=64):
    ks = jax.random.split(key, 6)
    C1, C2 = num_channels
    w1 = jax.random.normal(ks[0], (C1, input_dim, kernel_size), jnp.float32) * 0.5
    b1 = jax.random.normal(ks[1], (C1,), jnp.float32) * 0.1
    w2 = jax.random.normal(ks[2], (C2, C1, kernel_size), jnp.float32) \
        * (1.0 / (C1 * kernel_size) ** 0.5)
    b2 = jax.random.normal(ks[3], (C2,), jnp.float32) * 0.1
    wl = jax.random.normal(ks[4], (output_size, C2), jnp.float32) * (1.0 / C2 ** 0.5)
    bl = jax.random.normal(ks[5], (output_size,), jnp.float32) * 0.1
    return w1, b1, w2, b2, wl, bl


def ref_forward(x, w1, b1, w2, b2, wl, bl, matmul_dtype=jnp.float32):
    """Pure-JAX reference matching the PyTorch module semantics.
    matmul_dtype=bfloat16 mirrors the kernel's MXU operand precision
    (f32 accumulation), matmul_dtype=float32 is the exact reference."""
    B, N, L = x.shape
    prec = (lax.Precision.HIGHEST if matmul_dtype == jnp.float32
            else lax.Precision.DEFAULT)
    h = x.reshape(B * N, 1, L).astype(jnp.float32)
    dn1 = lax.conv_dimension_numbers(h.shape, w1.shape, ("NCH", "OIH", "NCH"))
    h = lax.conv_general_dilated(h, w1, (1,), [(1, 1)], dimension_numbers=dn1,
                                 precision=lax.Precision.HIGHEST)
    h = jax.nn.relu(h + b1[None, :, None])
    hm = h.astype(matmul_dtype)
    w2m = w2.astype(matmul_dtype)
    dn2 = lax.conv_dimension_numbers(hm.shape, w2m.shape, ("NCH", "OIH", "NCH"))
    h = lax.conv_general_dilated(hm, w2m, (1,), [(1, 1)], dimension_numbers=dn2,
                                 preferred_element_type=jnp.float32,
                                 precision=prec)
    h = jax.nn.relu(h + b2[None, :, None])
    pooled = jnp.max(h, axis=-1)                              # (B*N, C2)
    out = jnp.dot(pooled.astype(matmul_dtype), wl.T.astype(matmul_dtype),
                  preferred_element_type=jnp.float32, precision=prec) + bl
    return out.reshape(B, N, -1)


if __name__ == "__main__":
    key = jax.random.PRNGKey(0)
    kx, kp = jax.random.split(key)

    B, N, L = 2, 4, 16                 # batch=2, num_nodes=4, seq_len=16
    x = jax.random.normal(kx, (B, N, L), jnp.float32)
    params = init_params(kp)

    out = temporal_encoder_tcn(x, *params)
    out = jax.block_until_ready(out)
    assert out.shape == (B, N, 64), out.shape

    # Tight check against a reference with matching MXU precision (bf16 operands,
    # f32 accumulation) -> verifies the kernel math / layout exactly.
    ref_bf = ref_forward(x, *params, matmul_dtype=jnp.bfloat16)
    err_bf = float(jnp.max(jnp.abs(out - ref_bf)))
    assert jnp.allclose(out, ref_bf, atol=5e-3, rtol=5e-3), err_bf

    # Sanity check against the full-f32 reference (tolerance accounts for bf16
    # operand rounding in the two MXU matmuls).
    ref_f32 = ref_forward(x, *params, matmul_dtype=jnp.float32)
    err_f32 = float(jnp.max(jnp.abs(out - ref_f32)))
    assert jnp.allclose(out, ref_f32, atol=5e-2, rtol=5e-2), err_f32

    print("KERNEL_OK")
</pallas_src>

<mosaic_0001>
module attributes {stable_mosaic.version = 11 : i64} {
  func.func @_tcn_kernel(%arg0: i32, %arg1: memref<8x16xf32, #tpu.memory_space<vmem>>, %arg2: memref<3x128xf32, #tpu.memory_space<vmem>>, %arg3: memref<1x128xf32, #tpu.memory_space<vmem>>, %arg4: memref<384x128xbf16, #tpu.memory_space<vmem>>, %arg5: memref<1x128xf32, #tpu.memory_space<vmem>>, %arg6: memref<128x128xbf16, #tpu.memory_space<vmem>>, %arg7: memref<1x128xf32, #tpu.memory_space<vmem>>, %arg8: memref<8x128xf32, #tpu.memory_space<vmem>>) attributes {dimension_semantics = [#tpu.dimension_semantics<parallel>], iteration_bounds = array<i64: 1>, scalar_prefetch = 0 : i64, scratch_operands = 0 : i64, tpu.core_type = #tpu.core_type<tc>, window_params = [{transform_indices = @transform_0, window_bounds = array<i64: 8, 16>}, {pipeline_mode = #tpu.pipeline_mode<synchronous>, transform_indices = @transform_1, window_bounds = array<i64: 3, 128>}, {pipeline_mode = #tpu.pipeline_mode<synchronous>, transform_indices = @transform_2, window_bounds = array<i64: 1, 128>}, {pipeline_mode = #tpu.pipeline_mode<synchronous>, transform_indices = @transform_3, window_bounds = array<i64: 384, 128>}, {pipeline_mode = #tpu.pipeline_mode<synchronous>, transform_indices = @transform_4, window_bounds = array<i64: 1, 128>}, {pipeline_mode = #tpu.pipeline_mode<synchronous>, transform_indices = @transform_5, window_bounds = array<i64: 128, 128>}, {pipeline_mode = #tpu.pipeline_mode<synchronous>, transform_indices = @transform_6, window_bounds = array<i64: 1, 128>}, {transform_indices = @transform_7, window_bounds = array<i64: 8, 128>}]} {
    %c0 = arith.constant 0 : index
    %c0_0 = arith.constant 0 : index
    %0 = vector.load %arg1[%c0, %c0_0] : memref<8x16xf32, #tpu.memory_space<vmem>>, vector<8x16xf32>
    %cst = arith.constant 0.000000e+00 : f32
    %1 = vector.broadcast %cst : f32 to vector<8x1xf32>
    %2 = vector.extract_strided_slice %0 {offsets = [0, 0], sizes = [8, 15], strides = [1, 1]} : vector<8x16xf32> to vector<8x15xf32>
    %3 = tpu.concatenate %1, %2 in 1 : vector<8x1xf32>, vector<8x15xf32> -> vector<8x16xf32>
    %4 = vector.extract_strided_slice %0 {offsets = [0, 1], sizes = [8, 15], strides = [1, 1]} : vector<8x16xf32> to vector<8x15xf32>
    %5 = tpu.concatenate %4, %1 in 1 : vector<8x15xf32>, vector<8x1xf32> -> vector<8x16xf32>
    %c0_1 = arith.constant 0 : index
    %c0_2 = arith.constant 0 : index
    %6 = vector.load %arg2[%c0_1, %c0_2] : memref<3x128xf32, #tpu.memory_space<vmem>>, vector<3x128xf32>
    %7 = vector.shape_cast %3 : vector<8x16xf32> to vector<8x16x1xf32>
    %8 = vector.extract_strided_slice %6 {offsets = [0, 0], sizes = [1, 128], strides = [1, 1]} : vector<3x128xf32> to vector<1x128xf32>
    %9 = vector.shape_cast %8 : vector<1x128xf32> to vector<128xf32>
    %10 = vector.shape_cast %9 : vector<128xf32> to vector<1x1x128xf32>
    %11 = vector.broadcast %7 : vector<8x16x1xf32> to vector<8x16x128xf32>
    %12 = vector.broadcast %10 : vector<1x1x128xf32> to vector<8x16x128xf32>
    %13 = arith.mulf %11, %12 : vector<8x16x128xf32>
    %14 = vector.shape_cast %0 : vector<8x16xf32> to vector<8x16x1xf32>
    %15 = vector.extract_strided_slice %6 {offsets = [1, 0], sizes = [1, 128], strides = [1, 1]} : vector<3x128xf32> to vector<1x128xf32>
    %16 = vector.shape_cast %15 : vector<1x128xf32> to vector<128xf32>
    %17 = vector.shape_cast %16 : vector<128xf32> to vector<1x1x128xf32>
    %18 = vector.broadcast %14 : vector<8x16x1xf32> to vector<8x16x128xf32>
    %19 = vector.broadcast %17 : vector<1x1x128xf32> to vector<8x16x128xf32>
    %20 = arith.mulf %18, %19 : vector<8x16x128xf32>
    %21 = arith.addf %13, %20 : vector<8x16x128xf32>
    %22 = vector.shape_cast %5 : vector<8x16xf32> to vector<8x16x1xf32>
    %23 = vector.extract_strided_slice %6 {offsets = [2, 0], sizes = [1, 128], strides = [1, 1]} : vector<3x128xf32> to vector<1x128xf32>
    %24 = vector.shape_cast %23 : vector<1x128xf32> to vector<128xf32>
    %25 = vector.shape_cast %24 : vector<128xf32> to vector<1x1x128xf32>
    %26 = vector.broadcast %22 : vector<8x16x1xf32> to vector<8x16x128xf32>
    %27 = vector.broadcast %25 : vector<1x1x128xf32> to vector<8x16x128xf32>
    %28 = arith.mulf %26, %27 : vector<8x16x128xf32>
    %29 = arith.addf %21, %28 : vector<8x16x128xf32>
    %c0_3 = arith.constant 0 : index
    %c0_4 = arith.constant 0 : index
    %30 = vector.load %arg3[%c0_3, %c0_4] : memref<1x128xf32, #tpu.memory_space<vmem>>, vector<1x128xf32>
    %31 = vector.shape_cast %30 : vector<1x128xf32> to vector<128xf32>
    %32 = vector.shape_cast %31 : vector<128xf32> to vector<1x1x128xf32>
    %33 = vector.broadcast %32 : vector<1x1x128xf32> to vector<8x16x128xf32>
    %34 = arith.addf %29, %33 : vector<8x16x128xf32>
    %cst_5 = arith.constant 0.000000e+00 : f32
    %35 = vector.broadcast %cst_5 : f32 to vector<8x16x128xf32>
    %36 = arith.maximumf %34, %35 : vector<8x16x128xf32>
    %37 = arith.truncf %36 : vector<8x16x128xf32> to vector<8x16x128xbf16>
    %cst_6 = arith.constant 0.000000e+00 : bf16
    %38 = vector.broadcast %cst_6 : bf16 to vector<8x1x128xbf16>
    %39 = vector.extract_strided_slice %37 {offsets = [0, 0, 0], sizes = [8, 15, 128], strides = [1, 1, 1]} : vector<8x16x128xbf16> to vector<8x15x128xbf16>
    %40 = tpu.concatenate %38, %39 in 1 : vector<8x1x128xbf16>, vector<8x15x128xbf16> -> vector<8x16x128xbf16>
    %41 = vector.extract_strided_slice %37 {offsets = [0, 1, 0], sizes = [8, 15, 128], strides = [1, 1, 1]} : vector<8x16x128xbf16> to vector<8x15x128xbf16>
    %42 = tpu.concatenate %41, %38 in 1 : vector<8x15x128xbf16>, vector<8x1x128xbf16> -> vector<8x16x128xbf16>
    %43 = tpu.concatenate %40, %37, %42 in 2 : vector<8x16x128xbf16>, vector<8x16x128xbf16>, vector<8x16x128xbf16> -> vector<8x16x384xbf16>
    %44 = vector.shape_cast %43 : vector<8x16x384xbf16> to vector<128x384xbf16>
    %c0_7 = arith.constant 0 : index
    %c0_8 = arith.constant 0 : index
    %45 = vector.load %arg4[%c0_7, %c0_8] : memref<384x128xbf16, #tpu.memory_space<vmem>>, vector<384x128xbf16>
    %cst_9 = arith.constant dense<0.000000e+00> : vector<128x128xf32>
    %46 = tpu.matmul %44, %45, %cst_9 {dimension_numbers = #tpu.dot_dimension_numbers<[1], [0], [0], [1], [0, 0, 1, 1], [], []>} : vector<128x384xbf16>, vector<384x128xbf16>, vector<128x128xf32> -> vector<128x128xf32>
    %c0_10 = arith.constant 0 : index
    %c0_11 = arith.constant 0 : index
    %47 = vector.load %arg5[%c0_10, %c0_11] : memref<1x128xf32, #tpu.memory_space<vmem>>, vector<1x128xf32>
    %48 = vector.shape_cast %47 : vector<1x128xf32> to vector<128xf32>
    %49 = vector.shape_cast %48 : vector<128xf32> to vector<1x128xf32>
    %50 = vector.broadcast %49 : vector<1x128xf32> to vector<128x128xf32>
    %51 = arith.addf %46, %50 : vector<128x128xf32>
    %cst_12 = arith.constant 0.000000e+00 : f32
    %52 = vector.broadcast %cst_12 : f32 to vector<128x128xf32>
    %53 = arith.maximumf %51, %52 : vector<128x128xf32>
    %54 = vector.shape_cast %53 : vector<128x128xf32> to vector<8x16x128xf32>
    %cst_13 = arith.constant dense<0xFF800000> : vector<8x128xf32>
    %55 = vector.multi_reduction <maximumf>, %54, %cst_13 [1] : vector<8x16x128xf32> to vector<8x128xf32>
    %56 = arith.truncf %55 : vector<8x128xf32> to vector<8x128xbf16>
    %c0_14 = arith.constant 0 : index
    %c0_15 = arith.constant 0 : index
    %57 = vector.load %arg6[%c0_14, %c0_15] : memref<128x128xbf16, #tpu.memory_space<vmem>>, vector<128x128xbf16>
    %cst_16 = arith.constant dense<0.000000e+00> : vector<8x128xf32>
    %58 = tpu.matmul %56, %57, %cst_16 {dimension_numbers = #tpu.dot_dimension_numbers<[1], [0], [0], [1], [0, 0, 1, 1], [], []>} : vector<8x128xbf16>, vector<128x128xbf16>, vector<8x128xf32> -> vector<8x128xf32>
    %c0_17 = arith.constant 0 : index
    %c0_18 = arith.constant 0 : index
    %59 = vector.load %arg7[%c0_17, %c0_18] : memref<1x128xf32, #tpu.memory_space<vmem>>, vector<1x128xf32>
    %60 = vector.shape_cast %59 : vector<1x128xf32> to vector<128xf32>
    %61 = vector.shape_cast %60 : vector<128xf32> to vector<1x128xf32>
    %62 = vector.broadcast %61 : vector<1x128xf32> to vector<8x128xf32>
    %63 = arith.addf %58, %62 : vector<8x128xf32>
    %c0_19 = arith.constant 0 : index
    %c0_20 = arith.constant 0 : index
    %64 = vector.load %arg8[%c0_19, %c0_20] : memref<8x128xf32, #tpu.memory_space<vmem>>, vector<8x128xf32>
    tpu.vector_store %arg8[%c0_19, %c0_20], %63 {strides = array<i32>} : memref<8x128xf32, #tpu.memory_space<vmem>>, vector<8x128xf32>,
    return
  }
  func.func @transform_0(%arg0: i32) -> (i32, i32) {
    %c0_i32 = arith.constant 0 : i32
    %c0_i32_0 = arith.constant 0 : i32
    return %arg0, %c0_i32 : i32, i32
  }
  func.func @transform_1(%arg0: i32) -> (i32, i32) {
    %c0_i32 = arith.constant 0 : i32
    %c0_i32_0 = arith.constant 0 : i32
    %c0_i32_1 = arith.constant 0 : i32
    return %c0_i32, %c0_i32_0 : i32, i32
  }
  func.func @transform_2(%arg0: i32) -> (i32, i32) {
    %c0_i32 = arith.constant 0 : i32
    %c0_i32_0 = arith.constant 0 : i32
    %c0_i32_1 = arith.constant 0 : i32
    return %c0_i32, %c0_i32_0 : i32, i32
  }
  func.func @transform_3(%arg0: i32) -> (i32, i32) {
    %c0_i32 = arith.constant 0 : i32
    %c0_i32_0 = arith.constant 0 : i32
    %c0_i32_1 = arith.constant 0 : i32
    return %c0_i32, %c0_i32_0 : i32, i32
  }
  func.func @transform_4(%arg0: i32) -> (i32, i32) {
    %c0_i32 = arith.constant 0 : i32
    %c0_i32_0 = arith.constant 0 : i32
    %c0_i32_1 = arith.constant 0 : i32
    return %c0_i32, %c0_i32_0 : i32, i32
  }
  func.func @transform_5(%arg0: i32) -> (i32, i32) {
    %c0_i32 = arith.constant 0 : i32
    %c0_i32_0 = arith.constant 0 : i32
    %c0_i32_1 = arith.constant 0 : i32
    return %c0_i32, %c0_i32_0 : i32, i32
  }
  func.func @transform_6(%arg0: i32) -> (i32, i32) {
    %c0_i32 = arith.constant 0 : i32
    %c0_i32_0 = arith.constant 0 : i32
    %c0_i32_1 = arith.constant 0 : i32
    return %c0_i32, %c0_i32_0 : i32, i32
  }
  func.func @transform_7(%arg0: i32) -> (i32, i32) {
    %c0_i32 = arith.constant 0 : i32
    %c0_i32_0 = arith.constant 0 : i32
    return %arg0, %c0_i32 : i32, i32
  }
}

</mosaic_0001>

<bundles_post_ra>
// kernel: temporal_encoder_tcn.1
= control target key start
LH: loop header
LB: loop body
LE: loop exit
PB: predicated region body
PF: predicated region fallthrough
CT: control target
= control target key end

     0   :  { %v41_v1 = vlaneseq  ;;  %s1422_s26 = smov 1   ;;  %s1423_s27 = smov 127   ;;  %s1818_s0 = inlined_call_operand.vmem [shape: f32[8,16], index: 0, kind: input, shape index: {}]   ;;  %s1819_s1 = inlined_call_operand.vmem [shape: f32[3,128], index: 1, kind: input, shape index: {}]   ;;  %s1820_s2 = inlined_call_operand.vmem [shape: f32[1,128], index: 2, kind: input, shape index: {}]   ;;  %s1821_s3 = inlined_call_operand.vmem [shape: bf16[384,128], index: 3, kind: input, shape index: {}]   ;;  %s1822_s4 = inlined_call_operand.vmem [shape: f32[1,128], index: 4, kind: input, shape index: {}]   ;;  %s1823_s5 = inlined_call_operand.vmem [shape: bf16[128,128], index: 5, kind: input, shape index: {}]   ;;  %s1824_s6 = inlined_call_operand.vmem [shape: f32[1,128], index: 6, kind: input, shape index: {}]   ;;  %s1825_s7 = inlined_call_operand.hbm [shape: f32[8,128], index: 7, kind: output, shape index: {}]  }
   0x1   :  { %v28_v0 = vld [vmem:[%s1818_s0] sm:$0xff] }
   0x2   :  { %30 = vrot.lane.b32.xlu0 %v28_v0, %s1422_s26  ;;  %v42_v2 = vshrl.u32 %v41_v1, 7 }
   0x4   :  { %v1470_v3 = vsub.s32 0, %v42_v2  ;;  %v1472_v4 = vsub.s32 1, %v42_v2  ;;  %v1476_v7 = vsub.s32 2, %v42_v2  ;;  %v1479_v9 = vsub.s32 3, %v42_v2 }
   0x5   :  { %v1482_v11 = vsub.s32 4, %v42_v2  ;;  %v1485_v13 = vsub.s32 5, %v42_v2  ;;  %v1488_v15 = vsub.s32 6, %v42_v2 }
   0x6   :  { %35 = vrot.lane.b32.xlu0 %v28_v0, %s1423_s27  ;;  %v152_v5 = vrot.slane %v28_v0, %v1470_v3  ;;  %v163_v6 = vrot.slane %v28_v0, %v1472_v4  ;;  %v174_v8 = vrot.slane %v28_v0, %v1476_v7  ;;  %v185_v10 = vrot.slane %v28_v0, %v1479_v9 }
   0x7   :  { %v196_v12 = vrot.slane %v28_v0, %v1482_v11  ;;  %v207_v14 = vrot.slane %v28_v0, %v1485_v13 }
   0x8   :  { %158 = vbcast.lane.b32.xlu1 %v152_v5, 264 }
   0xa   :  { %154 = vbcast.lane.b32.xlu0 %v152_v5, 256 }
   0xc   :  { %169 = vbcast.lane.b32.xlu1 %v163_v6, 264 }
   0xe   :  { %165 = vbcast.lane.b32.xlu0 %v163_v6, 256 }
  0x10   :  { %180 = vbcast.lane.b32.xlu1 %v174_v8, 264 }
  0x12   :  { %176 = vbcast.lane.b32.xlu0 %v174_v8, 256 }
  0x14   :  { %191 = vbcast.lane.b32.xlu1 %v185_v10, 264 }
  0x16   :  { %187 = vbcast.lane.b32.xlu0 %v185_v10, 256 }
  0x18   :  { %202 = vbcast.lane.b32.xlu1 %v196_v12, 264 }
  0x1a   :  { %198 = vbcast.lane.b32.xlu0 %v196_v12, 256 }
  0x1b   :  { %12 = vsyncpa [#allocation3], 0  ;;  %v218_v16 = vrot.slane %v28_v0, %v1488_v15  ;;  %v1491_v17 = vsub.s32 7, %v42_v2  ;;  %v1366_v19 = vld [vmem:[%s1821_s3 + $0x40] sm:$0xff]   ;;  %v1368_v21 = vld [vmem:[%s1821_s3 + $0x48] sm:$0xff]   ;;  %vm33_vm0 = vcmask 7168  }
  0x1c   :  { %213 = vbcast.lane.b32.xlu1 %v207_v14, 264  ;;  %v1367_v20 = vld [vmem:[%s1821_s3] sm:$0xff]   ;;  %1220 = vmatprep.subr.bf16.mxu0 %v1366_v19  ;;  %v1369_v22 = vld [vmem:[%s1821_s3 + $0x8] sm:$0xff]   ;;  %v1370_v23 = vld [vmem:[%s1821_s3 + $0x50] sm:$0xff]   ;;  %vm38_vm1 = vcmask 121856   ;;  %vm508_vm2 = vcmask 1040384  }
  0x1d   :  { %v229_v18 = vrot.slane %v28_v0, %v1491_v17  ;;  %1221 = vmatpush3.bf16.msra.mxu0 %v1367_v20  ;;  %v1371_v24 = vld [vmem:[%s1821_s3 + $0x80] sm:$0xff]   ;;  %v1372_v25 = vld [vmem:[%s1821_s3 + $0x10] sm:$0xff]   ;;  %v1373_v26 = vld [vmem:[%s1821_s3 + $0x58] sm:$0xff]   ;;  %vm509_vm3 = vsmask.f32 256  ;;  %vm543_vm4 = vcmask 1047552  }
  0x1e   :  { %209 = vbcast.lane.b32.xlu0 %v207_v14, 256  ;;  %1222 = vmatprep.subr.bf16.mxu0 %v1368_v21  ;;  %v1374_v27 = vld [vmem:[%s1821_s3 + $0x88] sm:$0xff]   ;;  %v1375_v28 = vld [vmem:[%s1821_s3 + $0x18] sm:$0xff]   ;;  %v1376_v29 = vld [vmem:[%s1821_s3 + $0x60] sm:$0xff]   ;;  %vm544_vm5 = vsmask.f32 7424 }
  0x1f   :  { %1309 = vmatprep.subr.bf16.mxu1 %v1371_v24  ;;  %v1377_v30 = vld [vmem:[%s1821_s3 + $0x90] sm:$0xff]   ;;  %v1378_v32 = vld [vmem:[%s1821_s3 + $0x20] sm:$0xff]   ;;  %v1379_v35 = vld [vmem:[%s1821_s3 + $0x68] sm:$0xff]   ;;  %vm1425_vm8 = vmmov 0   ;;  %vm1066_vm9 = vcmask 1041409   ;;  %vm1068_vm10 = vcmask 1042434  }
  0x20   :  { %224 = vbcast.lane.b32.xlu1 %v218_v16, 264  ;;  %1310 = vmatpush3.bf16.msra.mxu1 %v1371_v24  ;;  %v1380_v36 = vld [vmem:[%s1821_s3 + $0x98] sm:$0xff]   ;;  %v1381_v38 = vld [vmem:[%s1821_s3 + $0x28] sm:$0xff]   ;;  %v1382_v41 = vld [vmem:[%s1821_s3 + $0x70] sm:$0xff]   ;;  %vm1070_vm11 = vcmask 1043459   ;;  %vm1072_vm12 = vcmask 1044484  }
  0x21   :  { %1223 = vmatpush3.bf16.msra.mxu0 %v1369_v22  ;;  %1311 = vmatprep.subr.bf16.mxu1 %v1374_v27  ;;  %v1383_v42 = vld [vmem:[%s1821_s3 + $0xa0] sm:$0xff]   ;;  %v1384_v43 = vld [vmem:[%s1821_s3 + $0x30] sm:$0xff]   ;;  %v1385_v45 = vld [vmem:[%s1821_s3 + $0x78] sm:$0xff]   ;;  %vm1074_vm13 = vcmask 1045509   ;;  %vm1076_vm14 = vcmask 1046534   ;;  %vm1078_vm15 = vcmask 1047559  }
  0x22   :  { %220 = vbcast.lane.b32.xlu0 %v218_v16, 256  ;;  %1224 = vmatprep.subr.bf16.mxu0 %v1370_v23  ;;  %v1386_v46 = vld [vmem:[%s1821_s3 + $0xa8] sm:$0xff]   ;;  %v1387_v47 = vld [vmem:[%s1821_s3 + $0x38] sm:$0xff]   ;;  %v1388_v49 = vld [vmem:[%s1821_s3 + $0xb0] sm:$0xff]   ;;  %s1426_s23 = smov [#allocation2]  }
  0x23   :  { %v1389_v51 = vld [vmem:[%s1821_s3 + $0xb8] sm:$0xff]   ;;  %vm1662_vm6 = vmand %vm508_vm2, %vm509_vm3  ;;  %s1177_s24 = sshll.u32 %s1426_s23, 4  ;;  %s1178_s24 = int_to_ptr.vmem [resolvable:$true] %s1177_s24 }
  0x24   :  { %235 = vbcast.lane.b32.xlu1 %v229_v18, 264  ;;  %1312 = vmatpush3.bf16.msra.mxu1 %v1374_v27  ;;  %vm1669_vm7 = vmand %vm543_vm4, %vm544_vm5  ;;  %s1398_s25 = scalar_lea.vmem %s1178_s24, 128  ;;  %p1403_p1 = scmp.lt.s32.totalorder %s1178_s24, %s1178_s24 }
  0x25   :  { %1225 = vmatpush3.bf16.msra.mxu0 %v1372_v25  ;;  %1313 = vmatprep.subr.bf16.mxu1 %v1377_v30  ;;  %p1399_p0 = scmp.ne.s32.totalorder %s1178_s24, %s1398_s25  ;;  %p1404_p2 = scmp.lt.s32.totalorder %s1398_s25, %s1398_s25 }
  0x26   :  { %231 = vbcast.lane.b32.xlu0 %v229_v18, 256  ;;  %1226 = vmatprep.subr.bf16.mxu0 %v1373_v26 }
  0x27   :  { %p1405_p3 = por %p1404_p2, %p1403_p1 }
  0x28   :  { %1314 = vmatpush3.bf16.msra.mxu1 %v1377_v30 }
  0x29   :  { %1227 = vmatpush3.bf16.msra.mxu0 %v1375_v28  ;;  %1315 = vmatprep.subr.bf16.mxu1 %v1380_v36  ;;  %p1406_p4 = pnand %p1405_p3, %p1399_p0 }
  0x2a   :  { %1228 = vmatprep.subr.bf16.mxu0 %v1376_v29 }
  0x2c   :  { %1316 = vmatpush3.bf16.msra.mxu1 %v1380_v36 }
  0x2d   :  { %1229 = vmatpush3.bf16.msra.mxu0 %v1378_v32  ;;  %1317 = vmatprep.subr.bf16.mxu1 %v1383_v42 }
  0x2e   :  { %1230 = vmatprep.subr.bf16.mxu0 %v1379_v35 }
  0x30   :  { %1318 = vmatpush3.bf16.msra.mxu1 %v1383_v42 }
  0x31   :  { %1231 = vmatpush3.bf16.msra.mxu0 %v1381_v38  ;;  %1319 = vmatprep.subr.bf16.mxu1 %v1386_v46 }
  0x32   :  { %1232 = vmatprep.subr.bf16.mxu0 %v1382_v41 }
  0x34   :  { %1320 = vmatpush3.bf16.msra.mxu1 %v1386_v46 }
  0x35   :  { %1233 = vmatpush3.bf16.msra.mxu0 %v1384_v43  ;;  %1321 = vmatprep.subr.bf16.mxu1 %v1388_v49 }
  0x36   :  { %1234 = vmatprep.subr.bf16.mxu0 %v1385_v45 }
  0x38   :  { %1322 = vmatpush3.bf16.msra.mxu1 %v1388_v49 }
  0x39   :  { %1235 = vmatpush3.bf16.msra.mxu0 %v1387_v47  ;;  %1323 = vmatprep.subr.bf16.mxu1 %v1389_v51 }
  0x3c   :  { %1324 = vmatpush3.bf16.msra.mxu1 %v1389_v51 }
  0x74   :  { %v31_v31 = vpop.permute.xlu0 %30 }
  0x75   :  { %v1533_v33 = vsel %vm33_vm0, 0.0, %v31_v31 }
  0x76   :  { %v44_v34 = vrot.slane %v1533_v33, %v1470_v3  ;;  %v55_v44 = vrot.slane %v1533_v33, %v1472_v4  ;;  %v66_v50 = vrot.slane %v1533_v33, %v1476_v7  ;;  %v77_v53 = vrot.slane %v1533_v33, %v1479_v9 }
  0x77   :  { %v88_v55 = vrot.slane %v1533_v33, %v1482_v11  ;;  %v99_v57 = vrot.slane %v1533_v33, %v1485_v13  ;;  %v110_v59 = vrot.slane %v1533_v33, %v1488_v15  ;;  %v121_v61 = vrot.slane %v1533_v33, %v1491_v17 }
  0x78   :  { %v36_v37 = vpop.permute.xlu0 %35  ;;  %46 = vbcast.lane.b32.xlu1 %v44_v34, 256 }
  0x79   :  { %v1546_v39 = vsel %vm38_vm1, %v36_v37, 0.0 }
  0x7a   :  { %v276_v40 = vrot.slane %v1546_v39, %v1470_v3  ;;  %v287_v48 = vrot.slane %v1546_v39, %v1472_v4  ;;  %v298_v52 = vrot.slane %v1546_v39, %v1476_v7  ;;  %v309_v54 = vrot.slane %v1546_v39, %v1479_v9  ;;  %v159_v63 = vpop.permute.xlu1 %158 }
  0x7b   :  { %v320_v56 = vrot.slane %v1546_v39, %v1482_v11  ;;  %v331_v58 = vrot.slane %v1546_v39, %v1485_v13  ;;  %v342_v60 = vrot.slane %v1546_v39, %v1488_v15  ;;  %v353_v62 = vrot.slane %v1546_v39, %v1491_v17  ;;  %v40_v17 = vld [vmem:[%s1819_s1] sm:$0x7] }
  0x7c   :  { %50 = vbcast.lane.b32.xlu1 %v44_v34, 264  ;;  %278 = vbcast.lane.b32.xlu0 %v276_v40, 256  ;;  %v155_v0 = vpop.permute.xlu0 %154  ;;  %v1626_v18 = vrot.slane %v40_v17, %v1470_v3  ;;  %v1631_v21 = vrot.slane %v40_v17, %v1472_v4  ;;  %v1634_v22 = vrot.slane %v40_v17, %v1476_v7  ;;  %v1644_v4 = vld [vmem:[%s1820_s2] ss:$0 sm:$0xff] }
  0x7e   :  { %v170_v1 = vpop.permute.xlu1 %169  ;;  %v241_v24 = vmul.f32 %v1631_v21, %v155_v0  ;;  %v242_v29 = vmul.f32 %v1631_v21, %v159_v63 }
  0x80   :  { %282 = vbcast.lane.b32.xlu1 %v276_v40, 264  ;;  %57 = vbcast.lane.b32.xlu0 %v55_v44, 256  ;;  %v166_v2 = vpop.permute.xlu0 %165 }
  0x81   :  { %v243_v37 = vmul.f32 %v1631_v21, %v166_v2  ;;  %v1392_v2 = vld [vmem:[%s1823_s5 + $0x10] sm:$0xff]  }
  0x82   :  { %v1602_v5 = vpop.permute.xlu1 %180 }
  0x83   :  { %v246_v17 = vmul.f32 %v1631_v21, %v1602_v5 }
  0x84   :  { %61 = vbcast.lane.b32.xlu1 %v55_v44, 264  ;;  %289 = vbcast.lane.b32.xlu0 %v287_v48, 256  ;;  %v177_v6 = vpop.permute.xlu0 %176  ;;  %v244_v44 = vmul.f32 %v1631_v21, %v170_v1 }
  0x86   :  { %v1604_v8 = vpop.permute.xlu1 %191 }
  0x88   :  { %293 = vbcast.lane.b32.xlu1 %v287_v48, 264  ;;  %68 = vbcast.lane.b32.xlu0 %v66_v50, 256  ;;  %v1606_v9 = vpop.permute.xlu0 %187 }
  0x8a   :  { %v1608_v10 = vpop.permute.xlu1 %202 }
  0x8c   :  { %72 = vbcast.lane.b32.xlu1 %v66_v50, 264  ;;  %300 = vbcast.lane.b32.xlu0 %v298_v52, 256  ;;  %v1610_v11 = vpop.permute.xlu0 %198 }
  0x8e   :  { %v1612_v12 = vpop.permute.xlu1 %213 }
  0x90   :  { %304 = vbcast.lane.b32.xlu1 %v298_v52, 264  ;;  %79 = vbcast.lane.b32.xlu0 %v77_v53, 256  ;;  %v1614_v13 = vpop.permute.xlu0 %209 }
  0x92   :  { %v1616_v14 = vpop.permute.xlu1 %224 }
  0x94   :  { %83 = vbcast.lane.b32.xlu1 %v77_v53, 264  ;;  %311 = vbcast.lane.b32.xlu0 %v309_v54, 256  ;;  %v1618_v15 = vpop.permute.xlu0 %220 }
  0x96   :  { %v1620_v16 = vpop.permute.xlu1 %235 }
  0x98   :  { %315 = vbcast.lane.b32.xlu1 %v309_v54, 264  ;;  %90 = vbcast.lane.b32.xlu0 %v88_v55, 256  ;;  %v1628_v19 = vpop.permute.xlu0 %231  ;;  %v245_v54 = vmul.f32 %v1631_v21, %v177_v6 }
  0x9c   :  { %94 = vbcast.lane.b32.xlu1 %v88_v55, 264  ;;  %322 = vbcast.lane.b32.xlu0 %v320_v56, 256 }
  0xa0   :  { %326 = vbcast.lane.b32.xlu1 %v320_v56, 264  ;;  %101 = vbcast.lane.b32.xlu0 %v99_v57, 256 }
  0xa4   :  { %105 = vbcast.lane.b32.xlu1 %v99_v57, 264  ;;  %333 = vbcast.lane.b32.xlu0 %v331_v58, 256 }
  0xa8   :  { %337 = vbcast.lane.b32.xlu1 %v331_v58, 264  ;;  %112 = vbcast.lane.b32.xlu0 %v110_v59, 256 }
  0xac   :  { %116 = vbcast.lane.b32.xlu1 %v110_v59, 264  ;;  %344 = vbcast.lane.b32.xlu0 %v342_v60, 256 }
  0xb0   :  { %348 = vbcast.lane.b32.xlu1 %v342_v60, 264  ;;  %123 = vbcast.lane.b32.xlu0 %v121_v61, 256 }
  0xb4   :  { %127 = vbcast.lane.b32.xlu1 %v121_v61, 264  ;;  %355 = vbcast.lane.b32.xlu0 %v353_v62, 256 }
  0xb8   :  { %359 = vbcast.lane.b32.xlu1 %v353_v62, 264 }
  0xea   :  { %v47_v20 = vpop.permute.xlu1 %46 }
  0xeb   :  { %v133_v23 = vmul.f32 %v1626_v18, %v47_v20 }
  0xed   :  { %v257_v27 = vadd.f32 %v241_v24, %v133_v23 }
  0xee   :  { %v51_v25 = vpop.permute.xlu1 %50  ;;  %v279_v26 = vpop.permute.xlu0 %278 }
  0xef   :  { %v134_v28 = vmul.f32 %v1626_v18, %v51_v25  ;;  %v365_v3 = vmul.f32 %v1634_v22, %v279_v26  ;;  %v1393_v25 = vld [vmem:[%s1823_s5 + $0x18] sm:$0xff]  }
  0xf1   :  { %v381_v30 = vadd.f32 %v365_v3, %v257_v27  ;;  %v258_v32 = vadd.f32 %v242_v29, %v134_v28 }
  0xf2   :  { %v283_v7 = vpop.permute.xlu1 %282  ;;  %v58_v31 = vpop.permute.xlu0 %57 }
  0xf3   :  { %v366_v33 = vmul.f32 %v1634_v22, %v283_v7  ;;  %v135_v34 = vmul.f32 %v1626_v18, %v58_v31  ;;  %v404_v35 = vadd.f32 %v1644_v4, %v381_v30 }
  0xf5   :  { %v382_v36 = vadd.f32 %v366_v33, %v258_v32  ;;  %v259_v43 = vadd.f32 %v243_v37, %v135_v34  ;;  %v420_v45 = vmax.f32 %v404_v35, 0.0  ;;  %v247_v35 = vmul.f32 %v1631_v21, %v1606_v9 }
  0xf6   :  { %v62_v38 = vpop.permute.xlu1 %61  ;;  %v290_v39 = vpop.permute.xlu0 %289 }
  0xf7   :  { %v405_v40 = vadd.f32 %v1644_v4, %v382_v36  ;;  %v136_v41 = vmul.f32 %v1626_v18, %v62_v38  ;;  %v367_v42 = vmul.f32 %v1634_v22, %v290_v39 }
  0xf9   :  { %v421_v46 = vmax.f32 %v405_v40, 0.0  ;;  %v383_v47 = vadd.f32 %v367_v42, %v259_v43  ;;  %v260_v50 = vadd.f32 %v244_v44, %v136_v41 }
  0xfa   :  { %v294_v48 = vpop.permute.xlu1 %293  ;;  %v69_v49 = vpop.permute.xlu0 %68 }
  0xfb   :  { %v368_v51 = vmul.f32 %v1634_v22, %v294_v48  ;;  %v137_v52 = vmul.f32 %v1626_v18, %v69_v49  ;;  %v436_v53 = vpack.c.bf16 %v421_v46, %v420_v45  ;;  %v406_v57 = vadd.f32 %v1644_v4, %v383_v47 }
  0xfc   :  { %v248_v46 = vmul.f32 %v1631_v21, %v1604_v8 }
  0xfd   :  { %v384_v55 = vadd.f32 %v368_v51, %v260_v50  ;;  %785 = vmatprep.mubr.bf16.mxu0 %v436_v53  ;;  %v445_v56 = vshrl.u32 %v436_v53, 16  ;;  %v261_v58 = vadd.f32 %v245_v54, %v137_v52  ;;  %v448_v61 = vshll.u32 %v436_v53, 16 }
  0xfe   :  { %v73_v59 = vpop.permute.xlu1 %72  ;;  %v301_v60 = vpop.permute.xlu0 %300  ;;  %v422_v26 = vmax.f32 %v406_v57, 0.0  ;;  %v249_v57 = vmul.f32 %v1631_v21, %v1610_v11 }
  0xff   :  { %v407_v62 = vadd.f32 %v1644_v4, %v384_v55  ;;  %v138_v63 = vmul.f32 %v1626_v18, %v73_v59  ;;  %v369_v0 = vmul.f32 %v1634_v22, %v301_v60  ;;  %v447_v1 = vrot.slane %v445_v56, 7 }
 0x100   :  { %v519_v6 = vrot.slane %v448_v61, 1 }
 0x101   :  { %v423_v20 = vmax.f32 %v407_v62, 0.0  ;;  %v385_v23 = vadd.f32 %v369_v0, %v261_v58  ;;  %v450_v24 = vor.u32 %v448_v61, %v447_v1  ;;  %v262_v29 = vadd.f32 %v246_v17, %v138_v63 }
 0x102   :  { %v305_v27 = vpop.permute.xlu1 %304  ;;  %v80_v28 = vpop.permute.xlu0 %79  ;;  %v520_v3 = vor.u32 %v519_v6, %v445_v56 }
 0x103   :  { %v370_v30 = vmul.f32 %v1634_v22, %v305_v27  ;;  %v511_v7 = vsel %vm1662_vm6, 0, %v450_v24  ;;  %v139_v5 = vmul.f32 %v1626_v18, %v80_v28  ;;  %v437_v32 = vpack.c.bf16 %v423_v20, %v422_v26 }
 0x104   :  { %786 = vmatmul.mubr.bf16.vlgmr.msra.gmra.mrb[0].mxu0 %v511_v7  ;;  %v546_v31 = vsel %vm1669_vm7, %v520_v3, 0  ;;  %v408_v33 = vadd.f32 %v1644_v4, %v385_v23  ;;  %v250_v24 = vmul.f32 %v1631_v21, %v1608_v10 }
 0x105   :  { %v386_v34 = vadd.f32 %v370_v30, %v262_v29  ;;  %1325 = vmatprep.mubr.bf16.mxu1 %v546_v31  ;;  %793 = vmatprep.mubr.bf16.mxu0 %v437_v32  ;;  %v452_v38 = vshrl.u32 %v437_v32, 16  ;;  %v455_v39 = vshll.u32 %v437_v32, 16  ;;  %v263_v43 = vadd.f32 %v247_v35, %v139_v5 }
 0x106   :  { %v84_v36 = vpop.permute.xlu1 %83  ;;  %v312_v37 = vpop.permute.xlu0 %311  ;;  %v424_v47 = vmax.f32 %v408_v33, 0.0 }
 0x107   :  { %v409_v40 = vadd.f32 %v1644_v4, %v386_v34  ;;  %v140_v41 = vmul.f32 %v1626_v18, %v84_v36  ;;  %v371_v42 = vmul.f32 %v1634_v22, %v312_v37  ;;  %v454_v44 = vrot.slane %v452_v38, 7 }
 0x108   :  { %v521_v45 = vrot.slane %v455_v39, 1  ;;  %v251_v37 = vmul.f32 %v1631_v21, %v1614_v13 }
 0x109   :  { %v425_v48 = vmax.f32 %v409_v40, 0.0  ;;  %v387_v9 = vadd.f32 %v371_v42, %v263_v43  ;;  %v457_v51 = vor.u32 %v455_v39, %v454_v44  ;;  %v264_v53 = vadd.f32 %v248_v46, %v140_v41 }
 0x10a   :  { %v316_v49 = vpop.permute.xlu1 %315  ;;  %v91_v50 = vpop.permute.xlu0 %90  ;;  %v522_v52 = vor.u32 %v521_v45, %v452_v38 }
 0x10b   :  { %v372_v54 = vmul.f32 %v1634_v22, %v316_v49  ;;  %v141_v55 = vmul.f32 %v1626_v18, %v91_v50  ;;  %v438_v56 = vpack.c.bf16 %v425_v48, %v424_v47  ;;  %v512_v58 = vsel %vm1662_vm6, 0, %v457_v51 }
 0x10c   :  { %v547_v8 = vsel %vm1669_vm7, %v522_v52, 0  ;;  %794 = vmatmul.mubr.bf16.gmra.mrb[4].mxu0 %v512_v58  ;;  %v410_v61 = vadd.f32 %v1644_v4, %v387_v9  ;;  %v252_v48 = vmul.f32 %v1631_v21, %v1612_v12  ;;  %v253_v58 = vmul.f32 %v1631_v21, %v1618_v15 }
 0x10d   :  { %v388_v59 = vadd.f32 %v372_v54, %v264_v53  ;;  %1326 = vmatmul.mubr.bf16.vlgmr.msra.gmra.mrb[0].mxu1 %v547_v8  ;;  %v459_v60 = vshrl.u32 %v438_v56, 16  ;;  %v265_v62 = vadd.f32 %v249_v57, %v141_v55  ;;  %801 = vmatprep.mubr.bf16.mxu0 %v438_v56  ;;  %v462_v1 = vshll.u32 %v438_v56, 16 }
 0x10e   :  { %v95_v63 = vpop.permute.xlu1 %94  ;;  %v323_v0 = vpop.permute.xlu0 %322  ;;  %v426_v3 = vmax.f32 %v410_v61, 0.0 }
 0x10f   :  { %v411_v6 = vadd.f32 %v1644_v4, %v388_v59  ;;  %v142_v11 = vmul.f32 %v1626_v18, %v95_v63  ;;  %v373_v17 = vmul.f32 %v1634_v22, %v323_v0  ;;  %v461_v20 = vrot.slane %v459_v60, 7 }
 0x110   :  { %v523_v23 = vrot.slane %v462_v1, 1 }
 0x111   :  { %v427_v26 = vmax.f32 %v411_v6, 0.0  ;;  %v389_v27 = vadd.f32 %v373_v17, %v265_v62  ;;  %v464_v28 = vor.u32 %v462_v1, %v461_v20  ;;  %v266_v5 = vadd.f32 %v250_v24, %v142_v11 }
 0x112   :  { %v327_v29 = vpop.permute.xlu1 %326  ;;  %v102_v30 = vpop.permute.xlu0 %101  ;;  %v524_v7 = vor.u32 %v523_v23, %v459_v60  ;;  %v254_v23 = vmul.f32 %v1631_v21, %v1616_v14  ;;  %v255_v14 = vmul.f32 %v1631_v21, %v1628_v19  ;;  %v256_v19 = vmul.f32 %v1631_v21, %v1620_v16 }
 0x113   :  { %v374_v31 = vmul.f32 %v1634_v22, %v327_v29  ;;  %v513_v32 = vsel %vm1662_vm6, 0, %v464_v28  ;;  %v143_v33 = vmul.f32 %v1626_v18, %v102_v30  ;;  %v439_v35 = vpack.c.bf16 %v427_v26, %v426_v3 }
 0x114   :  { %v548_v34 = vsel %vm1669_vm7, %v524_v7, 0  ;;  %v412_v10 = vadd.f32 %v1644_v4, %v389_v27  ;;  %802 = vmatmul.mubr.bf16.gmra.mrb[8].mxu0 %v513_v32 }
 0x115   :  { %v390_v36 = vadd.f32 %v374_v31, %v266_v5  ;;  %1329 = vmatprep.mubr.bf16.mxu1 %v548_v34  ;;  %809 = vmatprep.mubr.bf16.mxu0 %v439_v35  ;;  %v466_v40 = vshrl.u32 %v439_v35, 16  ;;  %v469_v41 = vshll.u32 %v439_v35, 16  ;;  %v267_v45 = vadd.f32 %v251_v37, %v143_v33 }
 0x116   :  { %v106_v38 = vpop.permute.xlu1 %105  ;;  %v334_v39 = vpop.permute.xlu0 %333  ;;  %v428_v9 = vmax.f32 %v412_v10, 0.0 }
 0x117   :  { %v413_v42 = vadd.f32 %v1644_v4, %v390_v36  ;;  %v144_v43 = vmul.f32 %v1626_v18, %v106_v38  ;;  %v375_v44 = vmul.f32 %v1634_v22, %v334_v39  ;;  %v468_v46 = vrot.slane %v466_v40, 7 }
 0x118   :  { %v525_v47 = vrot.slane %v469_v41, 1 }
 0x119   :  { %v429_v49 = vmax.f32 %v413_v42, 0.0  ;;  %v391_v13 = vadd.f32 %v375_v44, %v267_v45  ;;  %v471_v52 = vor.u32 %v469_v41, %v468_v46  ;;  %v268_v54 = vadd.f32 %v252_v48, %v144_v43 }
 0x11a   :  { %v338_v50 = vpop.permute.xlu1 %337  ;;  %v113_v51 = vpop.permute.xlu0 %112  ;;  %v526_v53 = vor.u32 %v525_v47, %v466_v40 }
 0x11b   :  { %v376_v55 = vmul.f32 %v1634_v22, %v338_v50  ;;  %v145_v56 = vmul.f32 %v1626_v18, %v113_v51  ;;  %v440_v57 = vpack.c.bf16 %v429_v49, %v428_v9  ;;  %v514_v8 = vsel %vm1662_vm6, 0, %v471_v52 }
 0x11c   :  { %v549_v12 = vsel %vm1669_vm7, %v526_v53, 0  ;;  %810 = vmatmul.mubr.bf16.gmra.mrb[12].mxu0 %v514_v8  ;;  %v414_v61 = vadd.f32 %v1644_v4, %v391_v13 }
 0x11d   :  { %v392_v59 = vadd.f32 %v376_v55, %v268_v54  ;;  %1330 = vmatmul.mubr.bf16.gmra.mrb[4].mxu1 %v549_v12  ;;  %v473_v60 = vshrl.u32 %v440_v57, 16  ;;  %v269_v62 = vadd.f32 %v253_v58, %v145_v56  ;;  %817 = vmatprep.mubr.bf16.mxu0 %v440_v57  ;;  %v476_v1 = vshll.u32 %v440_v57, 16 }
 0x11e   :  { %v117_v63 = vpop.permute.xlu1 %116  ;;  %v345_v0 = vpop.permute.xlu0 %344  ;;  %v430_v28 = vmax.f32 %v414_v61, 0.0 }
 0x11f   :  { %v415_v6 = vadd.f32 %v1644_v4, %v392_v59  ;;  %v146_v15 = vmul.f32 %v1626_v18, %v117_v63  ;;  %v377_v11 = vmul.f32 %v1634_v22, %v345_v0  ;;  %v475_v17 = vrot.slane %v473_v60, 7 }
 0x120   :  { %v527_v20 = vrot.slane %v476_v1, 1 }
 0x121   :  { %v431_v24 = vmax.f32 %v415_v6, 0.0  ;;  %v393_v26 = vadd.f32 %v377_v11, %v269_v62  ;;  %v478_v27 = vor.u32 %v476_v1, %v475_v17  ;;  %v270_v7 = vadd.f32 %v254_v23, %v146_v15 }
 0x122   :  { %v349_v3 = vpop.permute.xlu1 %348  ;;  %v124_v29 = vpop.permute.xlu0 %123  ;;  %v528_v30 = vor.u32 %v527_v20, %v473_v60  ;;  %v1390_v20 = vld [vmem:[%s1823_s5] sm:$0xff]   ;;  %v1424_v23 = vmov 0.0  }
 0x123   :  { %v378_v5 = vmul.f32 %v1634_v22, %v349_v3  ;;  %v147_v31 = vmul.f32 %v1626_v18, %v124_v29  ;;  %v515_v32 = vsel %vm1662_vm6, 0, %v478_v27  ;;  %v441_v34 = vpack.c.bf16 %v431_v24, %v430_v28  ;;  %1341 = vmatprep.subr.bf16.mxu1 %v1424_v23  ;;  %v1391_v24 = vld [vmem:[%s1823_s5 + $0x8] sm:$0xff]   ;;  %v1396_v28 = vld [vmem:[%s1823_s5 + $0x30] sm:$0xff]   ;;  %v1397_v3 = vld [vmem:[%s1823_s5 + $0x38] sm:$0xff]  }
 0x124   :  { %v550_v33 = vsel %vm1669_vm7, %v528_v30, 0  ;;  %v416_v35 = vadd.f32 %v1644_v4, %v393_v26  ;;  %818 = vmatmul.mubr.bf16.gmra.mrb[16].mxu0 %v515_v32  ;;  %1342 = vmatpush3.bf16.msra.mxu1 %v1390_v20  ;;  %v1394_v26 = vld [vmem:[%s1823_s5 + $0x20] sm:$0xff]   ;;  %v1395_v27 = vld [vmem:[%s1823_s5 + $0x28] sm:$0xff]  }
 0x125   :  { %v394_v10 = vadd.f32 %v378_v5, %v270_v7  ;;  %1333 = vmatprep.mubr.bf16.mxu1 %v550_v33  ;;  %825 = vmatprep.mubr.bf16.mxu0 %v441_v34  ;;  %v480_v38 = vshrl.u32 %v441_v34, 16  ;;  %v483_v39 = vshll.u32 %v441_v34, 16  ;;  %v271_v41 = vadd.f32 %v255_v14, %v147_v31  ;;  %v1785_v33 = vld [vmem:[%s1822_s4] ss:$0 sm:$0xff] }
 0x126   :  { %v128_v36 = vpop.permute.xlu1 %127  ;;  %v356_v37 = vpop.permute.xlu0 %355  ;;  %v432_v46 = vmax.f32 %v416_v35, 0.0  ;;  %1343 = vmatprep.subr.bf16.mxu1 %v1424_v23 }
 0x127   :  { %v417_v40 = vadd.f32 %v1644_v4, %v394_v10  ;;  %v148_v42 = vmul.f32 %v1626_v18, %v128_v36  ;;  %v379_v43 = vmul.f32 %v1634_v22, %v356_v37  ;;  %v482_v44 = vrot.slane %v480_v38, 7 }
 0x128   :  { %v529_v45 = vrot.slane %v483_v39, 1  ;;  %1344 = vmatpush3.bf16.msra.mxu1 %v1391_v24 }
 0x129   :  { %v433_v47 = vmax.f32 %v417_v40, 0.0  ;;  %v395_v48 = vadd.f32 %v379_v43, %v271_v41  ;;  %v485_v49 = vor.u32 %v483_v39, %v482_v44  ;;  %v272_v50 = vadd.f32 %v256_v19, %v148_v42  ;;  %1345 = vmatprep.subr.bf16.mxu1 %v1424_v23 }
 0x12a   :  { %v360_v9 = vpop.permute.xlu1 %359  ;;  %v530_v13 = vor.u32 %v529_v45, %v480_v38 }
 0x12b   :  { %v380_v51 = vmul.f32 %v1634_v22, %v360_v9  ;;  %v442_v52 = vpack.c.bf16 %v433_v47, %v432_v46  ;;  %v516_v18 = vsel %vm1662_vm6, 0, %v485_v49  ;;  %v418_v54 = vadd.f32 %v1644_v4, %v395_v48 }
 0x12c   :  { %v551_v53 = vsel %vm1669_vm7, %v530_v13, 0  ;;  %826 = vmatmul.mubr.bf16.gmra.mrb[20].mxu0 %v516_v18  ;;  %1346 = vmatpush3.bf16.msra.mxu1 %v1392_v2 }
 0x12d   :  { %v396_v55 = vadd.f32 %v380_v51, %v272_v50  ;;  %1334 = vmatmul.mubr.bf16.gmra.mrb[8].mxu1 %v551_v53  ;;  %v487_v16 = vshrl.u32 %v442_v52, 16  ;;  %v490_v21 = vshll.u32 %v442_v52, 16  ;;  %833 = vmatprep.mubr.bf16.mxu0 %v442_v52  ;;  %v434_v22 = vmax.f32 %v418_v54, 0.0 }
 0x12e   :  { %1347 = vmatprep.subr.bf16.mxu1 %v1424_v23 }
 0x12f   :  { %v419_v56 = vadd.f32 %v1644_v4, %v396_v55  ;;  %v489_v57 = vrot.slane %v487_v16, 7  ;;  %v531_v58 = vrot.slane %v490_v21, 1 }
 0x130   :  { %1348 = vmatpush3.bf16.msra.mxu1 %v1393_v25 }
 0x131   :  { %v435_v8 = vmax.f32 %v419_v56, 0.0  ;;  %v492_v12 = vor.u32 %v490_v21, %v489_v57  ;;  %v532_v59 = vor.u32 %v531_v58, %v487_v16  ;;  %1349 = vmatprep.subr.bf16.mxu1 %v1424_v23 }
 0x133   :  { %v517_v60 = vsel %vm1662_vm6, 0, %v492_v12  ;;  %v552_v61 = vsel %vm1669_vm7, %v532_v59, 0  ;;  %v443_v62 = vpack.c.bf16 %v435_v8, %v434_v22 }
 0x134   :  { %1337 = vmatprep.mubr.bf16.mxu1 %v552_v61  ;;  %834 = vmatmul.mubr.bf16.gmra.mrb[24].mxu0 %v517_v60 }
 0x135   :  { %v494_v63 = vshrl.u32 %v443_v62, 16  ;;  %v497_v0 = vshll.u32 %v443_v62, 16  ;;  %841 = vmatprep.mubr.bf16.mxu0 %v443_v62  ;;  %1350 = vmatpush3.bf16.msra.mxu1 %v1394_v26 }
 0x136   :  { %1351 = vmatprep.subr.bf16.mxu1 %v1424_v23 }
 0x137   :  { %v496_v1 = vrot.slane %v494_v63, 7  ;;  %v533_v4 = vrot.slane %v497_v0, 1 }
 0x139   :  { %v499_v6 = vor.u32 %v497_v0, %v496_v1  ;;  %v534_v15 = vor.u32 %v533_v4, %v494_v63  ;;  %1352 = vmatpush3.bf16.msra.mxu1 %v1395_v27 }
 0x13a   :  { %1353 = vmatprep.subr.bf16.mxu1 %v1424_v23 }
 0x13b   :  { %v518_v11 = vsel %vm1662_vm6, 0, %v499_v6  ;;  %v553_v17 = vsel %vm1669_vm7, %v534_v15, 0 }
 0x13c   :  { %1338 = vmatmul.mubr.bf16.gmra.mrb[12].mxu1 %v553_v17  ;;  %842 = vmatmul.mubr.bf16.gmra.mrb[28].mxu0 %v518_v11 }
 0x13d   :  { %1354 = vmatpush3.bf16.msra.mxu1 %v1396_v28  ;;  %1357 = vmatprep.mubr.msk.bf16.mxu1 %vm1425_vm8, %v1424_v23 }
 0x13e   :  { %1355 = vmatprep.subr.bf16.mxu1 %v1424_v23 }
 0x141   :  { %1356 = vmatpush3.bf16.msra.mxu1 %v1397_v3 }
 0x1d7   :  { %v1236_v29 = vpop.f32.mrb[0].mxu0 }
 0x1d8   :  { %v1237_v30 = vpop.f32.mrb[1].mxu0 }
 0x1d9   :  { %v1238_v7 = vadd.f32 %v1237_v30, %v1236_v29  ;;  %v1239_v5 = vpop.f32.mrb[2].mxu0 }
 0x1da   :  { %v1240_v31 = vpop.f32.mrb[3].mxu0 }
 0x1db   :  { %v1241_v32 = vadd.f32 %v1240_v31, %v1239_v5  ;;  %v788_v35 = vadd.f32 %v1238_v7, %v1785_v33 }
 0x1dd   :  { %v791_v41 = vadd.f32 %v1241_v32, %v1785_v33 }
 0x1df   :  { %v1242_v34 = vpop.f32.mrb[4].mxu0 }
 0x1e0   :  { %v1327_v14 = vpop.f32.mrb[0].mxu1  ;;  %v1243_v10 = vpop.f32.mrb[5].mxu0 }
 0x1e1   :  { %v884_v36 = vpop.f32.mrb[1].mxu1  ;;  %v1244_v37 = vadd.f32 %v1243_v10, %v1242_v34  ;;  %v1245_v39 = vpop.f32.mrb[6].mxu0 }
 0x1e2   :  { %v885_v38 = vadd.f32 %v884_v36, %v788_v35  ;;  %v1328_v40 = vpop.f32.mrb[2].mxu1  ;;  %v1246_v42 = vpop.f32.mrb[7].mxu0 }
 0x1e3   :  { %v887_v43 = vpop.f32.mrb[3].mxu1  ;;  %v796_v44 = vadd.f32 %v1244_v37, %v1785_v33  ;;  %v1247_v45 = vadd.f32 %v1246_v42, %v1245_v39 }
 0x1e4   :  { %v888_v19 = vadd.f32 %v887_v43, %v791_v41  ;;  %v947_v47 = vmax.f32 %v885_v38, 0.0 }
 0x1e5   :  { %v893_v46 = vadd.f32 %v1327_v14, %v796_v44  ;;  %v799_v48 = vadd.f32 %v1247_v45, %v1785_v33 }
 0x1e6   :  { %v948_v9 = vmax.f32 %v888_v19, 0.0 }
 0x1e7   :  { %v896_v49 = vadd.f32 %v1328_v40, %v799_v48  ;;  %v1248_v50 = vpop.f32.mrb[8].mxu0  ;;  %v949_v52 = vmax.f32 %v893_v46, 0.0 }
 0x1e8   :  { %v963_v13 = vmax.f32 %v947_v47, %v948_v9  ;;  %v1249_v51 = vpop.f32.mrb[9].mxu0 }
 0x1e9   :  { %v950_v18 = vmax.f32 %v896_v49, 0.0  ;;  %v1250_v54 = vadd.f32 %v1249_v51, %v1248_v50  ;;  %v1251_v55 = vpop.f32.mrb[10].mxu0 }
 0x1ea   :  { %v964_v53 = vrot.slane %v963_v13, 4  ;;  %v1252_v16 = vpop.f32.mrb[11].mxu0 }
 0x1eb   :  { %v970_v21 = vmax.f32 %v949_v52, %v950_v18  ;;  %v1253_v57 = vadd.f32 %v1252_v16, %v1251_v55  ;;  %v804_v61 = vadd.f32 %v1250_v54, %v1785_v33 }
 0x1ec   :  { %v965_v56 = vmax.f32 %v963_v13, %v964_v53 }
 0x1ed   :  { %v971_v58 = vrot.slane %v970_v21, 4  ;;  %v807_v20 = vadd.f32 %v1253_v57, %v1785_v33 }
 0x1ee   :  { %v966_v22 = vrot.slane %v965_v56, 2 }
 0x1ef   :  { %v972_v8 = vmax.f32 %v970_v21, %v971_v58  ;;  %v1254_v59 = vpop.f32.mrb[12].mxu0 }
 0x1f0   :  { %v967_v12 = vmax.f32 %v965_v56, %v966_v22  ;;  %v1331_v60 = vpop.f32.mrb[4].mxu1  ;;  %v1255_v62 = vpop.f32.mrb[13].mxu0 }
 0x1f1   :  { %v900_v63 = vpop.f32.mrb[5].mxu1  ;;  %v973_v0 = vrot.slane %v972_v8, 2  ;;  %v1256_v4 = vadd.f32 %v1255_v62, %v1254_v59  ;;  %v1257_v15 = vpop.f32.mrb[14].mxu0 }
 0x1f2   :  { %v968_v1 = vrot.slane %v967_v12, 1  ;;  %v901_v6 = vadd.f32 %v900_v63, %v804_v61  ;;  %v1332_v11 = vpop.f32.mrb[6].mxu1  ;;  %v1258_v17 = vpop.f32.mrb[15].mxu0 }
 0x1f3   :  { %v903_v23 = vpop.f32.mrb[7].mxu1  ;;  %v974_v24 = vmax.f32 %v972_v8, %v973_v0  ;;  %v812_v25 = vadd.f32 %v1256_v4, %v1785_v33  ;;  %v1259_v26 = vadd.f32 %v1258_v17, %v1257_v15 }
 0x1f4   :  { %v969_v2 = vmax.f32 %v967_v12, %v968_v1  ;;  %v904_v27 = vadd.f32 %v903_v23, %v807_v20  ;;  %v951_v29 = vmax.f32 %v901_v6, 0.0 }
 0x1f5   :  { %v975_v28 = vrot.slane %v974_v24, 1  ;;  %v909_v3 = vadd.f32 %v1331_v60, %v812_v25  ;;  %v815_v30 = vadd.f32 %v1259_v26, %v1785_v33 }
 0x1f6   :  { %v952_v7 = vmax.f32 %v904_v27, 0.0  ;;  %v1019_v31 = vpack.c.bf16 %v969_v2, %v969_v2 }
 0x1f7   :  { %v976_v5 = vmax.f32 %v974_v24, %v975_v28  ;;  %v1260_v32 = vpop.f32.mrb[16].mxu0  ;;  %v912_v34 = vadd.f32 %v1332_v11, %v815_v30  ;;  %v953_v38 = vmax.f32 %v909_v3, 0.0 }
 0x1f8   :  { %v977_v14 = vmax.f32 %v951_v29, %v952_v7  ;;  %v1261_v35 = vpop.f32.mrb[17].mxu0  ;;  %v1058_v43 = vunpack.c.l.b16 %v1019_v31 }
 0x1f9   :  { %v1020_v10 = vpack.c.bf16 %v976_v5, %v976_v5  ;;  %v1262_v36 = vadd.f32 %v1261_v35, %v1260_v32  ;;  %v1263_v37 = vpop.f32.mrb[18].mxu0  ;;  %v954_v39 = vmax.f32 %v912_v34, 0.0 }
 0x1fa   :  { %v978_v40 = vrot.slane %v977_v14, 4  ;;  %v1264_v41 = vpop.f32.mrb[19].mxu0 }
 0x1fb   :  { %v1059_v42 = vunpack.c.l.b16 %v1020_v10  ;;  %v1265_v44 = vadd.f32 %v1264_v41, %v1263_v37  ;;  %v984_v45 = vmax.f32 %v953_v38, %v954_v39  ;;  %v820_v13 = vadd.f32 %v1262_v36, %v1785_v33 }
 0x1fc   :  { %v979_v19 = vmax.f32 %v977_v14, %v978_v40 }
 0x1fd   :  { %v1067_v46 = vsel %vm1066_vm9, %v1059_v42, %v1058_v43  ;;  %v985_v47 = vrot.slane %v984_v45, 4  ;;  %v823_v21 = vadd.f32 %v1265_v44, %v1785_v33 }
 0x1fe   :  { %v980_v48 = vrot.slane %v979_v19, 2 }
 0x1ff   :  { %v1266_v9 = vpop.f32.mrb[20].mxu0  ;;  %v986_v50 = vmax.f32 %v984_v45, %v985_v47 }
 0x200   :  { %v1335_v49 = vpop.f32.mrb[8].mxu1  ;;  %v981_v51 = vmax.f32 %v979_v19, %v980_v48  ;;  %v1267_v52 = vpop.f32.mrb[21].mxu0 }
 0x201   :  { %v916_v18 = vpop.f32.mrb[9].mxu1  ;;  %v1268_v53 = vadd.f32 %v1267_v52, %v1266_v9  ;;  %v1269_v55 = vpop.f32.mrb[22].mxu0  ;;  %v987_v56 = vrot.slane %v986_v50, 2 }
 0x202   :  { %v917_v54 = vadd.f32 %v916_v18, %v820_v13  ;;  %v1336_v16 = vpop.f32.mrb[10].mxu1  ;;  %v982_v57 = vrot.slane %v981_v51, 1  ;;  %v1270_v58 = vpop.f32.mrb[23].mxu0 }
 0x203   :  { %v919_v22 = vpop.f32.mrb[11].mxu1  ;;  %v828_v8 = vadd.f32 %v1268_v53, %v1785_v33  ;;  %v1271_v12 = vadd.f32 %v1270_v58, %v1269_v55  ;;  %v988_v60 = vmax.f32 %v986_v50, %v987_v56 }
 0x204   :  { %v920_v59 = vadd.f32 %v919_v22, %v823_v21  ;;  %v983_v61 = vmax.f32 %v981_v51, %v982_v57  ;;  %v955_v63 = vmax.f32 %v917_v54, 0.0 }
 0x205   :  { %v925_v62 = vadd.f32 %v1335_v49, %v828_v8  ;;  %v831_v0 = vadd.f32 %v1271_v12, %v1785_v33  ;;  %v989_v4 = vrot.slane %v988_v60, 1 }
 0x206   :  { %v956_v1 = vmax.f32 %v920_v59, 0.0  ;;  %v1021_v6 = vpack.c.bf16 %v983_v61, %v983_v61 }
 0x207   :  { %v928_v15 = vadd.f32 %v1336_v16, %v831_v0  ;;  %v1272_v17 = vpop.f32.mrb[24].mxu0  ;;  %v990_v20 = vmax.f32 %v988_v60, %v989_v4  ;;  %v957_v2 = vmax.f32 %v925_v62, 0.0 }
 0x208   :  { %v991_v11 = vmax.f32 %v955_v63, %v956_v1  ;;  %v1060_v23 = vunpack.c.l.b16 %v1021_v6  ;;  %v1273_v24 = vpop.f32.mrb[25].mxu0 }
 0x209   :  { %v958_v25 = vmax.f32 %v928_v15, 0.0  ;;  %v1274_v27 = vadd.f32 %v1273_v24, %v1272_v17  ;;  %v1275_v28 = vpop.f32.mrb[26].mxu0  ;;  %v1022_v3 = vpack.c.bf16 %v990_v20, %v990_v20 }
 0x20a   :  { %v992_v26 = vrot.slane %v991_v11, 4  ;;  %v1069_v29 = vsel %vm1068_vm10, %v1060_v23, %v1067_v46  ;;  %v1276_v30 = vpop.f32.mrb[27].mxu0 }
 0x20b   :  { %v998_v7 = vmax.f32 %v957_v2, %v958_v25  ;;  %v1277_v31 = vadd.f32 %v1276_v30, %v1275_v28  ;;  %v1061_v32 = vunpack.c.l.b16 %v1022_v3  ;;  %v836_v36 = vadd.f32 %v1274_v27, %v1785_v33 }
 0x20c   :  { %v993_v5 = vmax.f32 %v991_v11, %v992_v26 }
 0x20d   :  { %v999_v34 = vrot.slane %v998_v7, 4  ;;  %v1071_v35 = vsel %vm1070_vm11, %v1061_v32, %v1069_v29  ;;  %v839_v44 = vadd.f32 %v1277_v31, %v1785_v33 }
 0x20e   :  { %v994_v14 = vrot.slane %v993_v5, 2 }
 0x20f   :  { %v1339_v10 = vpop.f32.mrb[12].mxu1  ;;  %v1000_v37 = vmax.f32 %v998_v7, %v999_v34  ;;  %v1278_v39 = vpop.f32.mrb[28].mxu0  ;;  %v1211_v7 = vld [vmem:[%s1824_s6] ss:$0 sm:$0xff] }
 0x210   :  { %v995_v38 = vmax.f32 %v993_v5, %v994_v14  ;;  %v932_v40 = vpop.f32.mrb[13].mxu1  ;;  %v1279_v41 = vpop.f32.mrb[29].mxu0 }
 0x211   :  { %v933_v42 = vadd.f32 %v932_v40, %v836_v36  ;;  %v1340_v43 = vpop.f32.mrb[14].mxu1  ;;  %v1001_v45 = vrot.slane %v1000_v37, 2  ;;  %v1280_v46 = vadd.f32 %v1279_v41, %v1278_v39  ;;  %v1281_v47 = vpop.f32.mrb[30].mxu0 }
 0x212   :  { %v996_v19 = vrot.slane %v995_v38, 1  ;;  %v935_v48 = vpop.f32.mrb[15].mxu1  ;;  %v1282_v9 = vpop.f32.mrb[31].mxu0 }
 0x213   :  { %v936_v49 = vadd.f32 %v935_v48, %v839_v44  ;;  %v1002_v13 = vmax.f32 %v1000_v37, %v1001_v45  ;;  %v844_v51 = vadd.f32 %v1280_v46, %v1785_v33  ;;  %v1283_v52 = vadd.f32 %v1282_v9, %v1281_v47 }
 0x214   :  { %v997_v50 = vmax.f32 %v995_v38, %v996_v19  ;;  %v959_v18 = vmax.f32 %v933_v42, 0.0 }
 0x215   :  { %v960_v53 = vmax.f32 %v936_v49, 0.0  ;;  %v1003_v54 = vrot.slane %v1002_v13, 1  ;;  %v941_v16 = vadd.f32 %v1339_v10, %v844_v51  ;;  %v847_v21 = vadd.f32 %v1283_v52, %v1785_v33 }
 0x216   :  { %v1023_v55 = vpack.c.bf16 %v997_v50, %v997_v50 }
 0x217   :  { %v1005_v56 = vmax.f32 %v959_v18, %v960_v53  ;;  %v1004_v57 = vmax.f32 %v1002_v13, %v1003_v54  ;;  %v944_v22 = vadd.f32 %v1340_v43, %v847_v21  ;;  %v961_v60 = vmax.f32 %v941_v16, 0.0 }
 0x218   :  { %v1062_v58 = vunpack.c.l.b16 %v1023_v55 }
 0x219   :  { %v1006_v8 = vrot.slane %v1005_v56, 4  ;;  %v1024_v12 = vpack.c.bf16 %v1004_v57, %v1004_v57  ;;  %v962_v61 = vmax.f32 %v944_v22, 0.0 }
 0x21a   :  { %v1073_v59 = vsel %vm1072_vm12, %v1062_v58, %v1071_v35 }
 0x21b   :  { %v1007_v62 = vmax.f32 %v1005_v56, %v1006_v8  ;;  %v1063_v63 = vunpack.c.l.b16 %v1024_v12  ;;  %v1012_v0 = vmax.f32 %v961_v60, %v962_v61 }
 0x21d   :  { %v1008_v1 = vrot.slane %v1007_v62, 2  ;;  %v1013_v4 = vrot.slane %v1012_v0, 4  ;;  %v1075_v6 = vsel %vm1074_vm13, %v1063_v63, %v1073_v59 }
 0x21f   :  { %v1009_v15 = vmax.f32 %v1007_v62, %v1008_v1  ;;  %v1014_v11 = vmax.f32 %v1012_v0, %v1013_v4 }
 0x221   :  { %v1010_v33 = vrot.slane %v1009_v15, 1  ;;  %v1015_v17 = vrot.slane %v1014_v11, 2 }
 0x223   :  { %v1011_v20 = vmax.f32 %v1009_v15, %v1010_v33  ;;  %v1016_v23 = vmax.f32 %v1014_v11, %v1015_v17 }
 0x225   :  { %v1025_v24 = vpack.c.bf16 %v1011_v20, %v1011_v20  ;;  %v1017_v2 = vrot.slane %v1016_v23, 1 }
 0x227   :  { %v1064_v25 = vunpack.c.l.b16 %v1025_v24  ;;  %v1018_v26 = vmax.f32 %v1016_v23, %v1017_v2 }
 0x229   :  { %v1077_v27 = vsel %vm1076_vm14, %v1064_v25, %v1075_v6  ;;  %v1026_v28 = vpack.c.bf16 %v1018_v26, %v1018_v26 }
 0x22b   :  { %v1065_v3 = vunpack.c.l.b16 %v1026_v28 }
 0x22d   :  { %v1079_v29 = vsel %vm1078_vm15, %v1065_v3, %v1077_v27 }
 0x22e   :  { %v1080_v30 = vpack.c.b16 %v1079_v29, %v1079_v29 }
 0x230   :  { %1358 = vmatmul.mubr.bf16.vlgmr.msra.gmra.mrb[16].mxu1 %v1080_v30 }
 0x303   :  { %v1164_v5 = vpop.f32.mrb[16].mxu1 }
 0x304   :  { %v1165_v31 = vadd.f32 %v1211_v7, %v1164_v5  ;;  %v1359_v32 = vpop.f32.mrb[17].mxu1 }
 0x305   :  { %v1167_v34 = vpop.f32.mrb[18].mxu1 }
 0x306   :  { %1170 = vst [vmem:[#allocation2] sm:$0xff] %v1165_v31  ;;  %v1360_v14 = vpop.f32.mrb[19].mxu1 }
 0x307   :  { %1409 = shalt.err (!%p1406_p4)
}
 0x308   :  { %s1410_s6 = scalar_lea.hbm %s1825_s7, 128 }
 0x309   :  { %p1411_p5 = scmp.ne.s32.totalorder %s1825_s7, %s1410_s6  ;;  %p1414_p6 = scmp.lt.u32.totalorder %s1410_s6, %s1825_s7 }
 0x30b   :  { %p1416_p7 = pnand %p1414_p6, %p1411_p5 }
 0x30d   :  { %1419 = shalt.err (!%p1416_p7)
}
 0x30e   :  { %1180 = dma.vmem_to_hbm [thread:$0]  %s1178_s24, 128, %s1825_s7, [#allocation3]  }
 0x30f   :  { %1420 = dma.done.wait [#allocation3], 128  }
 0x310   :  { %1421 = vsyncadd [#allocation3], 4294967168 }
 0x311   :  { %1184 = vsyncpa [#allocation3], 1 }

</bundles_post_ra>
